<compile_context>
chip_gen: v5e
topology: v5e:2x2
jax: 0.10.0
libtpu: 0.0.40
codegen_flags: <defaults>
</compile_context>

<pallas_src>
import jax
import jax.numpy as jnp
from jax.experimental import pallas as pl
from jax.experimental.pallas import tpu as pltpu


def _conv1x1_sigmoid_kernel(x_ref, w_ref, b_ref, o_ref):
    # MXU matmul: bf16 x bf16 -> f32 accumulation, then bias + sigmoid.
    # The tiny (M, 64) f32->bf16 cast happens in VMEM (kept in-kernel on purpose).
    x_bf = x_ref[...].astype(jnp.bfloat16)
    acc = jnp.dot(x_bf, w_ref[...], preferred_element_type=jnp.float32)
    o_ref[...] = jax.nn.sigmoid(acc + b_ref[...]).astype(o_ref.dtype)


def prepare_params(weight, bias):
    """One-time parameter preparation (NOT on the per-call path).

    weight: (Cout, Cin, 1, 1) f32  ->  w_mat: (Cin, Cout) bf16
    bias:   (Cout,)           f32  ->  b_mat: (1, Cout)   f32
    """
    cout, cin = weight.shape[0], weight.shape[1]
    w_mat = jnp.asarray(weight.reshape(cout, cin).T, dtype=jnp.bfloat16)
    b_mat = jnp.asarray(bias, dtype=jnp.float32).reshape(1, cout)
    return w_mat, b_mat


def conv2d_1x1_sigmoid(x_nchw, w_mat, b_mat):
    """x_nchw: (N, Cin, H, W) f32; w_mat: (Cin, Cout) bf16; b_mat: (1, Cout) f32."""
    n, cin, h, w = x_nchw.shape
    cout = w_mat.shape[1]

    # For H=W=1 this is a pure reshape (no data movement). For H*W > 1 it stays
    # channels-last so only the M dimension grows (lane-dense Cout output).
    x_mat = jnp.transpose(x_nchw, (0, 2, 3, 1)).reshape(n * h * w, cin)
    m = x_mat.shape[0]

    # Advisory cost hint so XLA overlaps this cheap custom call with
    # surrounding HLO instead of scheduling it conservatively.
    cost = pl.CostEstimate(
        flops=2 * m * cin * cout,
        transcendentals=m * cout,                       # sigmoid exp per output
        bytes_accessed=(cin * cout * 2                  # bf16 weight
                        + cout * 4                      # f32 bias
                        + m * cin * 4                   # f32 input
                        + m * cout * 4),                # f32 output
    )

    out = pl.pallas_call(
        _conv1x1_sigmoid_kernel,
        out_shape=jax.ShapeDtypeStruct((m, cout), jnp.float32),
        in_specs=[
            pl.BlockSpec(memory_space=pltpu.MemorySpace.VMEM),  # x  (M, Cin)
            pl.BlockSpec(memory_space=pltpu.MemorySpace.VMEM),  # W  (Cin, Cout) bf16
            pl.BlockSpec(memory_space=pltpu.MemorySpace.VMEM),  # b  (1, Cout)
        ],
        out_specs=pl.BlockSpec(memory_space=pltpu.MemorySpace.VMEM),
        cost_estimate=cost,
    )(x_mat, w_mat, b_mat)

    # Back to NCHW. For H=W=1 this is again a pure reshape.
    return out.reshape(n, h, w, cout).transpose(0, 3, 1, 2)


if __name__ == "__main__":
    key = jax.random.PRNGKey(0)
    k_x, k_w, k_b = jax.random.split(key, 3)

    cin, cout = 64, 1536
    # Deterministic synthetic parameters (PyTorch-style uniform fan_in init).
    bound = 1.0 / (cin ** 0.5)
    weight = jax.random.uniform(k_w, (cout, cin, 1, 1), jnp.float32, -bound, bound)
    bias = jax.random.uniform(k_b, (cout,), jnp.float32, -bound, bound)

    # Input matching the module's forward: (1, 64, 1, 1), NCHW.
    x = jax.random.normal(k_x, (1, cin, 1, 1), jnp.float32)

    # One-time param prep (transpose + bf16 cast happen here, not per call).
    w_mat, b_mat = prepare_params(weight, bias)

    y = conv2d_1x1_sigmoid(x, w_mat, b_mat)
    jax.block_until_ready(y)
    assert y.shape == (1, cout, 1, 1), y.shape

    # --- Correctness checks ---
    x_row = x.reshape(1, cin)

    # (a) Tight check against the same bf16-rounded operands the MXU consumes.
    x_bf = x_row.astype(jnp.bfloat16).astype(jnp.float32)
    w_f32 = w_mat.astype(jnp.float32)                       # (Cin, Cout)
    ref_bf = jax.nn.sigmoid(x_bf @ w_f32 + bias[None, :]).reshape(1, cout, 1, 1)
    assert jnp.allclose(y, ref_bf, atol=1e-3, rtol=1e-3)

    # (b) Semantics check against the full-precision f32 conv+sigmoid
    #     (bf16 weight rounding is the only deviation; sigmoid output bounded).
    w_true = weight.reshape(cout, cin).T                    # (Cin, Cout) f32
    ref_f32 = jax.nn.sigmoid(x_row @ w_true + bias[None, :]).reshape(1, cout, 1, 1)
    assert jnp.max(jnp.abs(y - ref_f32)) < 2e-2

    print("KERNEL_OK")
</pallas_src>

<mosaic_0001>
module attributes {stable_mosaic.version = 11 : i64} {
  func.func @_conv1x1_sigmoid_kernel(%arg0: memref<1x64xf32, #tpu.memory_space<vmem>>, %arg1: memref<64x1536xbf16, #tpu.memory_space<vmem>>, %arg2: memref<1x1536xf32, #tpu.memory_space<vmem>>, %arg3: memref<1x1536xf32, #tpu.memory_space<vmem>>) attributes {dimension_semantics = [], scalar_prefetch = 0 : i64, scratch_operands = 0 : i64, tpu.core_type = #tpu.core_type<tc>} {
    %c0 = arith.constant 0 : index
    %c0_0 = arith.constant 0 : index
    %0 = vector.load %arg0[%c0, %c0_0] : memref<1x64xf32, #tpu.memory_space<vmem>>, vector<1x64xf32>
    %1 = arith.truncf %0 : vector<1x64xf32> to vector<1x64xbf16>
    %c0_1 = arith.constant 0 : index
    %c0_2 = arith.constant 0 : index
    %2 = vector.load %arg1[%c0_1, %c0_2] : memref<64x1536xbf16, #tpu.memory_space<vmem>>, vector<64x1536xbf16>
    %cst = arith.constant dense<0.000000e+00> : vector<1x1536xf32>
    %3 = tpu.matmul %1, %2, %cst {dimension_numbers = #tpu.dot_dimension_numbers<[1], [0], [0], [1], [0, 0, 1, 1], [], []>} : vector<1x64xbf16>, vector<64x1536xbf16>, vector<1x1536xf32> -> vector<1x1536xf32>
    %c0_3 = arith.constant 0 : index
    %c0_4 = arith.constant 0 : index
    %4 = vector.load %arg2[%c0_3, %c0_4] : memref<1x1536xf32, #tpu.memory_space<vmem>>, vector<1x1536xf32>
    %5 = arith.addf %3, %4 : vector<1x1536xf32>
    %6 = arith.negf %5 : vector<1x1536xf32>
    %7 = math.exp %6 : vector<1x1536xf32>
    %cst_5 = arith.constant 1.000000e+00 : f32
    %8 = vector.broadcast %cst_5 : f32 to vector<1x1536xf32>
    %9 = arith.addf %8, %7 : vector<1x1536xf32>
    %10 = arith.divf %8, %9 : vector<1x1536xf32>
    %c0_6 = arith.constant 0 : index
    %c0_7 = arith.constant 0 : index
    %11 = vector.load %arg3[%c0_6, %c0_7] : memref<1x1536xf32, #tpu.memory_space<vmem>>, vector<1x1536xf32>
    tpu.vector_store %arg3[%c0_6, %c0_7], %10 {strides = array<i32>} : memref<1x1536xf32, #tpu.memory_space<vmem>>, vector<1x1536xf32>,
    return
  }
}

</mosaic_0001>

<bundles_post_ra>
// kernel: tpu_custom_call.1
= control target key start
LH: loop header
LB: loop body
LE: loop exit
PB: predicated region body
PF: predicated region fallthrough
CT: control target
= control target key end

     0   :  { %8 = vsyncpa [#allocation3], 0  ;;  %s1615_s0 = inlined_call_operand.hbm [shape: f32[1,64], index: 0, kind: input, shape index: {}]   ;;  %s1616_s1 = inlined_call_operand.hbm [shape: bf16[64,1536], index: 1, kind: input, shape index: {}]   ;;  %s1617_s2 = inlined_call_operand.hbm [shape: f32[1,1536], index: 2, kind: input, shape index: {}]   ;;  %s1618_s3 = inlined_call_operand.hbm [shape: f32[1,1536], index: 3, kind: output, shape index: {}]  }
   0x1   :  { %9 = vsyncpa [#allocation6], 0  ;;  %s26_s14 = sshll.u32 %s1616_s1, 4  ;;  %s27_s14 = int_to_ptr.hbm [resolvable:$true] %s26_s14 }
   0x2   :  { %10 = vsyncpa [#allocation4], 0  ;;  %s1250_s15 = smov [#allocation5]   ;;  %s16_s19 = sshll.u32 %s1615_s0, 4  ;;  %s17_s19 = int_to_ptr.hbm [resolvable:$true] %s16_s19 }
   0x3   :  { %s28_s16 = sshll.u32 %s1250_s15, 4  ;;  %s1251_s20 = smov 768   ;;  %s29_s16 = int_to_ptr.vmem [resolvable:$true] %s28_s16 }
   0x4   :  { %s1252_s21 = smov 48   ;;  %s1253_s22 = smov [#allocation2]  }
   0x5   :  { %34 = dma.hbm_to_vmem [thread:$0]  %s27_s14, 6144, %s29_s16, [#allocation6], %s1251_s20, %s1251_s20, %s1252_s21  }
   0x6   :  { %s18_s23 = sshll.u32 %s1253_s22, 4  ;;  %s40_s26 = sshll.u32 %s1617_s2, 4  ;;  %s19_s23 = int_to_ptr.vmem [resolvable:$true] %s18_s23  ;;  %s41_s26 = int_to_ptr.hbm [resolvable:$true] %s40_s26 }
   0x7   :  { %21 = dma.hbm_to_vmem [thread:$0]  %s17_s19, 16, %s19_s23, [#allocation3]  }
   0x8   :  { %s1254_s1 = smov [#allocation7]  }
   0x9   :  { %s42_s27 = sshll.u32 %s1254_s1, 4  ;;  %s43_s27 = int_to_ptr.vmem [resolvable:$true] %s42_s27 }
   0xa   :  { %45 = dma.hbm_to_vmem [thread:$0]  %s41_s26, 192, %s43_s27, [#allocation6]  }
   0xb   :  { %1244 = dma.done.wait [#allocation3], 16  }
   0xc   :  { %1245 = vsyncadd [#allocation3], 4294967280 }
   0xd   :  { %1246 = dma.done.wait [#allocation6], 6336  }
   0xe   :  { %1247 = vsyncadd [#allocation6], 4294960960  ;;  %v976_v0 = vld [vmem:[#allocation5 + $0x120] sm:$0xf]  ;;  %v1088_v1 = vld [vmem:[#allocation5 + $0x14c] sm:$0xf0] }
   0xf   :  { %v1082_v2 = vld [vmem:[#allocation5 + $0x124] sm:$0xf]  ;;  %v977_v3 = vor.u32 %v1088_v1, %v976_v0  ;;  %v978_v4 = vld [vmem:[#allocation5 + $0x150] sm:$0xf0]  ;;  %v984_v5 = vld [vmem:[#allocation5 + $0x128] sm:$0xf] }
  0x10   :  { %v1089_v6 = vld [vmem:[#allocation5 + $0x154] sm:$0xf0]  ;;  %v981_v7 = vor.u32 %v1082_v2, %v978_v4  ;;  %v1083_v9 = vld [vmem:[#allocation5 + $0x12c] sm:$0xf]  ;;  %v986_v10 = vld [vmem:[#allocation5 + $0x158] sm:$0xf0] }
  0x11   :  { %v985_v8 = vor.u32 %v1089_v6, %v984_v5  ;;  %v928_v11 = vld [vmem:[#allocation5 + $0xc0] sm:$0xf]  ;;  %385 = vmatpush.bf16.msra.mxu0 %v977_v3  ;;  %v989_v12 = vor.u32 %v1083_v9, %v986_v10  ;;  %v1076_v13 = vld [vmem:[#allocation5 + $0xec] sm:$0xf0]  ;;  %v1070_v14 = vld [vmem:[#allocation5 + $0xc4] sm:$0xf] }
  0x12   :  { %v930_v15 = vld [vmem:[#allocation5 + $0xf0] sm:$0xf0]  ;;  %398 = vmatpush.bf16.msra.mxu1 %v981_v7  ;;  %v929_v16 = vor.u32 %v1076_v13, %v928_v11  ;;  %v936_v18 = vld [vmem:[#allocation5 + $0xc8] sm:$0xf]  ;;  %v1077_v19 = vld [vmem:[#allocation5 + $0xf4] sm:$0xf0] }
  0x13   :  { %411 = vmatpush.bf16.msra.mxu2 %v985_v8  ;;  %v933_v17 = vor.u32 %v1070_v14, %v930_v15  ;;  %v1071_v20 = vld [vmem:[#allocation5 + $0xcc] sm:$0xf]  ;;  %424 = vmatpush.bf16.msra.mxu3 %v989_v12  ;;  %v937_v21 = vor.u32 %v1077_v19, %v936_v18  ;;  %v938_v22 = vld [vmem:[#allocation5 + $0xf8] sm:$0xf0]  ;;  %v880_v23 = vld [vmem:[#allocation5 + $0x60] sm:$0xf] }
  0x14   :  { %v1064_v24 = vld [vmem:[#allocation5 + $0x8c] sm:$0xf0]  ;;  %v941_v25 = vor.u32 %v1071_v20, %v938_v22  ;;  %v1058_v26 = vld [vmem:[#allocation5 + $0x64] sm:$0xf]  ;;  %v882_v27 = vld [vmem:[#allocation5 + $0x90] sm:$0xf0] }
  0x15   :  { %v888_v28 = vld [vmem:[#allocation5 + $0x68] sm:$0xf]  ;;  %386 = vmatpush.bf16.msra.mxu0 %v929_v16  ;;  %v881_v29 = vor.u32 %v1064_v24, %v880_v23  ;;  %v1065_v30 = vld [vmem:[#allocation5 + $0x94] sm:$0xf0]  ;;  %v1059_v31 = vld [vmem:[#allocation5 + $0x6c] sm:$0xf]  ;;  %v885_v33 = vor.u32 %v1058_v26, %v882_v27 }
  0x16   :  { %v890_v32 = vld [vmem:[#allocation5 + $0x98] sm:$0xf0]  ;;  %399 = vmatpush.bf16.msra.mxu1 %v933_v17  ;;  %v889_v34 = vor.u32 %v1065_v30, %v888_v28  ;;  %v832_v35 = vld [vmem:[#allocation5] sm:$0xf]  ;;  %v1052_v36 = vld [vmem:[#allocation5 + $0x2c] sm:$0xf0] }
  0x17   :  { %412 = vmatpush.bf16.msra.mxu2 %v937_v21  ;;  %v1046_v37 = vld [vmem:[#allocation5 + $0x4] sm:$0xf]  ;;  %425 = vmatpush.bf16.msra.mxu3 %v941_v25  ;;  %v893_v38 = vor.u32 %v1059_v31, %v890_v32  ;;  %v834_v39 = vld [vmem:[#allocation5 + $0x30] sm:$0xf0]  ;;  %v840_v40 = vld [vmem:[#allocation5 + $0x8] sm:$0xf]  ;;  %v833_v45 = vor.u32 %v1052_v36, %v832_v35 }
  0x18   :  { %v1053_v41 = vld [vmem:[#allocation5 + $0x34] sm:$0xf0]  ;;  %v1047_v42 = vld [vmem:[#allocation5 + $0xc] sm:$0xf]  ;;  %v842_v43 = vld [vmem:[#allocation5 + $0x38] sm:$0xf0]  ;;  %v837_v49 = vor.u32 %v1046_v37, %v834_v39 }
  0x19   :  { %v59_v44 = vld [vmem:[#allocation2] sm:$0x1]  ;;  %387 = vmatpush.bf16.msra.mxu0 %v881_v29  ;;  %v1000_v46 = vld [vmem:[#allocation5 + $0x138] sm:$0xf]  ;;  %v1091_v47 = vld [vmem:[#allocation5 + $0x164] sm:$0xf0]  ;;  %v841_v50 = vor.u32 %v1053_v41, %v840_v40  ;;  %v845_v52 = vor.u32 %v1047_v42, %v842_v43 }
  0x1a   :  { %v1085_v48 = vld [vmem:[#allocation5 + $0x13c] sm:$0xf]  ;;  %400 = vmatpush.bf16.msra.mxu1 %v885_v33  ;;  %v1002_v51 = vld [vmem:[#allocation5 + $0x168] sm:$0xf0]  ;;  %v1001_v53 = vor.u32 %v1091_v47, %v1000_v46  ;;  %v992_v54 = vld [vmem:[#allocation5 + $0x130] sm:$0xf]  ;;  %v1285_v57 = vpack.c.bf16 %v59_v44, %v59_v44 }
  0x1b   :  { %413 = vmatpush.bf16.msra.mxu2 %v889_v34  ;;  %426 = vmatpush.bf16.msra.mxu3 %v893_v38  ;;  %v1090_v55 = vld [vmem:[#allocation5 + $0x15c] sm:$0xf0]  ;;  %v1084_v56 = vld [vmem:[#allocation5 + $0x134] sm:$0xf]  ;;  %v1005_v58 = vor.u32 %v1085_v48, %v1002_v51  ;;  %v994_v59 = vld [vmem:[#allocation5 + $0x160] sm:$0xf0] }
  0x1c   :  { %v952_v60 = vld [vmem:[#allocation5 + $0xd8] sm:$0xf]  ;;  %v1079_v61 = vld [vmem:[#allocation5 + $0x104] sm:$0xf0]  ;;  %vm377_vm0 = vcmask 523264   ;;  %v993_v0 = vor.u32 %v1090_v55, %v992_v54  ;;  %v997_v1 = vor.u32 %v1084_v56, %v994_v59  ;;  %vm787_vm7 = vcmask 1040384  }
  0x1d   :  { %388 = vmatpush.bf16.msra.mxu0 %v833_v45  ;;  %v1073_v62 = vld [vmem:[#allocation5 + $0xdc] sm:$0xf]  ;;  %v954_v63 = vld [vmem:[#allocation5 + $0x108] sm:$0xf0]  ;;  %v953_v2 = vor.u32 %v1079_v61, %v952_v60  ;;  %v944_v3 = vld [vmem:[#allocation5 + $0xd0] sm:$0xf] }
  0x1e   :  { %401 = vmatpush.bf16.msra.mxu1 %v837_v49  ;;  %v1078_v4 = vld [vmem:[#allocation5 + $0xfc] sm:$0xf0]  ;;  %v1072_v5 = vld [vmem:[#allocation5 + $0xd4] sm:$0xf]  ;;  %v957_v6 = vor.u32 %v1073_v62, %v954_v63  ;;  %v946_v7 = vld [vmem:[#allocation5 + $0x100] sm:$0xf0] }
  0x1f   :  { %414 = vmatpush.bf16.msra.mxu2 %v841_v50  ;;  %427 = vmatpush.bf16.msra.mxu3 %v845_v52  ;;  %v904_v8 = vld [vmem:[#allocation5 + $0x78] sm:$0xf]  ;;  %v1067_v9 = vld [vmem:[#allocation5 + $0xa4] sm:$0xf0]  ;;  %v1061_v10 = vld [vmem:[#allocation5 + $0x7c] sm:$0xf]  ;;  %v945_v12 = vor.u32 %v1078_v4, %v944_v3  ;;  %v949_v14 = vor.u32 %v1072_v5, %v946_v7 }
  0x20   :  { %1022 = vmatmul.msk.bf16.vlgmr.msra.gmra.mxu0 %vm377_vm0, %v1285_v57  ;;  %v906_v11 = vld [vmem:[#allocation5 + $0xa8] sm:$0xf0]  ;;  %v896_v13 = vld [vmem:[#allocation5 + $0x70] sm:$0xf]  ;;  %v905_v15 = vor.u32 %v1067_v9, %v904_v8  ;;  %v1066_v16 = vld [vmem:[#allocation5 + $0x9c] sm:$0xf0] }
  0x21   :  { %1023 = vmatmul.msk.bf16.vlgmr.msra.gmra.mxu1 %vm377_vm0, %v1285_v57  ;;  %437 = vmatpush.bf16.msrb.mxu0 %v993_v0  ;;  %v1060_v17 = vld [vmem:[#allocation5 + $0x74] sm:$0xf]  ;;  %v898_v18 = vld [vmem:[#allocation5 + $0xa0] sm:$0xf0]  ;;  %v909_v19 = vor.u32 %v1061_v10, %v906_v11  ;;  %v856_v20 = vld [vmem:[#allocation5 + $0x18] sm:$0xf]  ;;  %v897_v26 = vor.u32 %v1066_v16, %v896_v13 }
  0x22   :  { %1024 = vmatmul.msk.bf16.vlgmr.msra.gmra.mxu2 %vm377_vm0, %v1285_v57  ;;  %1025 = vmatmul.msk.bf16.vlgmr.msra.gmra.mxu3 %vm377_vm0, %v1285_v57  ;;  %v1055_v21 = vld [vmem:[#allocation5 + $0x44] sm:$0xf0]  ;;  %v1049_v22 = vld [vmem:[#allocation5 + $0x1c] sm:$0xf]  ;;  %v858_v23 = vld [vmem:[#allocation5 + $0x48] sm:$0xf0]  ;;  %v901_v30 = vor.u32 %v1060_v17, %v898_v18 }
  0x23   :  { %463 = vmatpush.bf16.msrb.mxu2 %v1001_v53  ;;  %476 = vmatpush.bf16.msrb.mxu3 %v1005_v58  ;;  %v1016_v24 = vld [vmem:[#allocation5 + $0x148] sm:$0xf]  ;;  %v1093_v25 = vld [vmem:[#allocation5 + $0x174] sm:$0xf0]  ;;  %v848_v27 = vld [vmem:[#allocation5 + $0x10] sm:$0xf]  ;;  %v857_v31 = vor.u32 %v1055_v21, %v856_v20  ;;  %v861_v35 = vor.u32 %v1049_v22, %v858_v23 }
  0x24   :  { %450 = vmatpush.bf16.msrb.mxu1 %v997_v1  ;;  %v1087_v28 = vld [vmem:[#allocation5 + $0x14c] sm:$0xf]  ;;  %v1018_v29 = vld [vmem:[#allocation5 + $0x178] sm:$0xf0]  ;;  %v1054_v32 = vld [vmem:[#allocation5 + $0x3c] sm:$0xf0]  ;;  %v1017_v36 = vor.u32 %v1093_v25, %v1016_v24 }
  0x25   :  { %438 = vmatpush.bf16.msrb.mxu0 %v945_v12  ;;  %v1048_v33 = vld [vmem:[#allocation5 + $0x14] sm:$0xf]  ;;  %v850_v34 = vld [vmem:[#allocation5 + $0x40] sm:$0xf0]  ;;  %v1008_v37 = vld [vmem:[#allocation5 + $0x140] sm:$0xf]  ;;  %v1021_v40 = vor.u32 %v1087_v28, %v1018_v29  ;;  %v849_v44 = vor.u32 %v1054_v32, %v848_v27 }
  0x26   :  { %v1092_v38 = vld [vmem:[#allocation5 + $0x16c] sm:$0xf0]  ;;  %v1086_v39 = vld [vmem:[#allocation5 + $0x144] sm:$0xf]  ;;  %v1010_v41 = vld [vmem:[#allocation5 + $0x170] sm:$0xf0]  ;;  %v853_v45 = vor.u32 %v1048_v33, %v850_v34 }
  0x27   :  { %464 = vmatpush.bf16.msrb.mxu2 %v953_v2  ;;  %477 = vmatpush.bf16.msrb.mxu3 %v957_v6  ;;  %v968_v42 = vld [vmem:[#allocation5 + $0xe8] sm:$0xf]  ;;  %v1081_v43 = vld [vmem:[#allocation5 + $0x114] sm:$0xf0]  ;;  %v1009_v46 = vor.u32 %v1092_v38, %v1008_v37  ;;  %v1075_v47 = vld [vmem:[#allocation5 + $0xec] sm:$0xf]  ;;  %v1013_v49 = vor.u32 %v1086_v39, %v1010_v41 }
  0x28   :  { %451 = vmatpush.bf16.msrb.mxu1 %v949_v14  ;;  %v970_v48 = vld [vmem:[#allocation5 + $0x118] sm:$0xf0]  ;;  %v969_v50 = vor.u32 %v1081_v43, %v968_v42  ;;  %v960_v51 = vld [vmem:[#allocation5 + $0xe0] sm:$0xf]  ;;  %v1080_v52 = vld [vmem:[#allocation5 + $0x10c] sm:$0xf0] }
  0x29   :  { %439 = vmatpush.bf16.msrb.mxu0 %v897_v26  ;;  %v1074_v53 = vld [vmem:[#allocation5 + $0xe4] sm:$0xf]  ;;  %v962_v54 = vld [vmem:[#allocation5 + $0x110] sm:$0xf0]  ;;  %v920_v55 = vld [vmem:[#allocation5 + $0x88] sm:$0xf]  ;;  %v973_v58 = vor.u32 %v1075_v47, %v970_v48  ;;  %v961_v59 = vor.u32 %v1080_v52, %v960_v51 }
  0x2a   :  { %v1069_v56 = vld [vmem:[#allocation5 + $0xb4] sm:$0xf0]  ;;  %v1063_v60 = vld [vmem:[#allocation5 + $0x8c] sm:$0xf]  ;;  %v922_v61 = vld [vmem:[#allocation5 + $0xb8] sm:$0xf0]  ;;  %v965_v62 = vor.u32 %v1074_v53, %v962_v54 }
  0x2b   :  { %465 = vmatpush.bf16.msrb.mxu2 %v905_v15  ;;  %478 = vmatpush.bf16.msrb.mxu3 %v909_v19  ;;  %v921_v63 = vor.u32 %v1069_v56, %v920_v55  ;;  %v912_v0 = vld [vmem:[#allocation5 + $0x80] sm:$0xf]  ;;  %v1068_v1 = vld [vmem:[#allocation5 + $0xac] sm:$0xf0]  ;;  %v1062_v2 = vld [vmem:[#allocation5 + $0x84] sm:$0xf]  ;;  %v925_v6 = vor.u32 %v1063_v60, %v922_v61 }
  0x2c   :  { %452 = vmatpush.bf16.msrb.mxu1 %v901_v30  ;;  %v914_v3 = vld [vmem:[#allocation5 + $0xb0] sm:$0xf0]  ;;  %v872_v4 = vld [vmem:[#allocation5 + $0x28] sm:$0xf]  ;;  %v1057_v5 = vld [vmem:[#allocation5 + $0x54] sm:$0xf0]  ;;  %v913_v7 = vor.u32 %v1068_v1, %v912_v0 }
  0x2d   :  { %440 = vmatpush.bf16.msrb.mxu0 %v849_v44  ;;  %v1051_v8 = vld [vmem:[#allocation5 + $0x2c] sm:$0xf]  ;;  %v917_v9 = vor.u32 %v1062_v2, %v914_v3  ;;  %v873_v10 = vor.u32 %v1057_v5, %v872_v4  ;;  %v874_v11 = vld [vmem:[#allocation5 + $0x58] sm:$0xf0]  ;;  %v864_v12 = vld [vmem:[#allocation5 + $0x20] sm:$0xf] }
  0x2e   :  { %v1056_v13 = vld [vmem:[#allocation5 + $0x4c] sm:$0xf0]  ;;  %v1050_v14 = vld [vmem:[#allocation5 + $0x24] sm:$0xf]  ;;  %v866_v15 = vld [vmem:[#allocation5 + $0x50] sm:$0xf0]  ;;  %v877_v16 = vor.u32 %v1051_v8, %v874_v11 }
  0x2f   :  { %466 = vmatpush.bf16.msrb.mxu2 %v857_v31  ;;  %479 = vmatpush.bf16.msrb.mxu3 %v861_v35  ;;  %v865_v17 = vor.u32 %v1056_v13, %v864_v12  ;;  %v869_v18 = vor.u32 %v1050_v14, %v866_v15  ;;  %v109_v19 = vld [vmem:[#allocation7] sm:$0xff]  ;;  %v1331_v2 = vld [vmem:[#allocation7 + $0x8] sm:$0xf]  ;;  %s1255_s0 = smov [#allocation8]   ;;  %s819_s30 = sshll.u32 %s1618_s3, 4  ;;  %s820_s30 = int_to_ptr.hbm [resolvable:$true] %s819_s30 }
  0x30   :  { %453 = vmatpush.bf16.msrb.mxu1 %v853_v45  ;;  %1026 = vmatmul.msk.bf16.vlgmr.msrb.gmra.mxu0 %vm377_vm0, %v1285_v57  ;;  %v353_v20 = vperm.slane %v109_v19, 0  ;;  %v354_v21 = vperm.slane %v109_v19, 1  ;;  %v355_v28 = vperm.slane %v109_v19, 2  ;;  %v356_v29 = vperm.slane %v109_v19, 3  ;;  %s817_s2 = sshll.u32 %s1255_s0, 4  ;;  %s818_s2 = int_to_ptr.vmem [resolvable:$true] %s817_s2 }
  0x31   :  { %489 = vmatpush.bf16.msra.mxu0 %v1009_v46  ;;  %v357_v41 = vperm.slane %v109_v19, 4  ;;  %v358_v45 = vperm.slane %v109_v19, 5  ;;  %v361_v11 = vperm.slane %v1331_v2, 0 }
  0x32   :  { %1028 = vmatmul.msk.bf16.vlgmr.msrb.gmra.mxu2 %vm377_vm0, %v1285_v57  ;;  %1029 = vmatmul.msk.bf16.vlgmr.msrb.gmra.mxu3 %vm377_vm0, %v1285_v57 }
  0x33   :  { %515 = vmatpush.bf16.msra.mxu2 %v1017_v36  ;;  %528 = vmatpush.bf16.msra.mxu3 %v1021_v40 }
  0x34   :  { %502 = vmatpush.bf16.msra.mxu1 %v1013_v49 }
  0x35   :  { %1027 = vmatmul.msk.bf16.vlgmr.msrb.gmra.mxu1 %vm377_vm0, %v1285_v57  ;;  %490 = vmatpush.bf16.msra.mxu0 %v961_v59  ;;  %v360_v59 = vperm.slane %v109_v19, 7 }
  0x37   :  { %516 = vmatpush.bf16.msra.mxu2 %v969_v50  ;;  %529 = vmatpush.bf16.msra.mxu3 %v973_v58  ;;  %v359_v58 = vperm.slane %v109_v19, 6 }
  0x38   :  { %503 = vmatpush.bf16.msra.mxu1 %v965_v62 }
  0x39   :  { %491 = vmatpush.bf16.msra.mxu0 %v913_v7 }
  0x3b   :  { %517 = vmatpush.bf16.msra.mxu2 %v921_v63  ;;  %530 = vmatpush.bf16.msra.mxu3 %v925_v6 }
  0x3c   :  { %504 = vmatpush.bf16.msra.mxu1 %v917_v9 }
  0x3d   :  { %492 = vmatpush.bf16.msra.mxu0 %v865_v17 }
  0x3f   :  { %518 = vmatpush.bf16.msra.mxu2 %v873_v10  ;;  %531 = vmatpush.bf16.msra.mxu3 %v877_v16  ;;  %v362_v16 = vperm.slane %v1331_v2, 1 }
  0x40   :  { %505 = vmatpush.bf16.msra.mxu1 %v869_v18  ;;  %1030 = vmatmul.msk.bf16.vlgmr.msra.gmra.mxu0 %vm377_vm0, %v1285_v57  ;;  %v363_v18 = vperm.slane %v1331_v2, 2 }
  0x42   :  { %1032 = vmatmul.msk.bf16.vlgmr.msra.gmra.mxu2 %vm377_vm0, %v1285_v57  ;;  %1033 = vmatmul.msk.bf16.vlgmr.msra.gmra.mxu3 %vm377_vm0, %v1285_v57 }
  0x45   :  { %1031 = vmatmul.msk.bf16.vlgmr.msra.gmra.mxu1 %vm377_vm0, %v1285_v57 }
  0x9d   :  { %v390_v22 = vpop.f32.mrf.mxu0 }
  0x9e   :  { %v391_v23 = vadd.f32 %v390_v22, %v353_v20  ;;  %v403_v24 = vpop.f32.mrf.mxu1 }
  0x9f   :  { %v404_v25 = vadd.f32 %v403_v24, %v354_v21 }
  0xa0   :  { %v1034_v26 = vmul.f32 -1.442695, %v391_v23 }
  0xa1   :  { %v1035_v27 = vmul.f32 -1.442695, %v404_v25 }
  0xa2   :  { %1100 = vpow2.f32 %v1034_v26 }
  0xa3   :  { %1102 = vpow2.f32 %v1035_v27 }
  0xa5   :  { %v416_v30 = vpop.f32.mrf.mxu2  ;;  %v429_v32 = vpop.f32.mrf.mxu3 }
  0xa6   :  { %v417_v31 = vadd.f32 %v416_v30, %v355_v28  ;;  %v392_v33 = vpop.f32.mrf.mxu0  ;;  %v430_v34 = vadd.f32 %v429_v32, %v356_v29  ;;  %v405_v35 = vpop.f32.mrf.mxu1 }
  0xa8   :  { %v1036_v57 = vmul.f32 -1.442695, %v417_v31  ;;  %v1101_v36 = vpop.eup %1100  ;;  %v1037_v37 = vmul.f32 -1.442695, %v430_v34  ;;  %v364_v31 = vperm.slane %v1331_v2, 3 }
  0xa9   :  { %v1103_v38 = vpop.eup %1102  ;;  %v1311_v39 = vadd.f32 1.0, %v1101_v36 }
  0xaa   :  { %1104 = vpow2.f32 %v1036_v57  ;;  %v1313_v40 = vadd.f32 1.0, %v1103_v38 }
  0xab   :  { %1106 = vpow2.f32 %v1037_v37  ;;  %v594_v13 = vand.u32 2147483647, %v1311_v39  ;;  %v596_v14 = vand.u32 2147483648, %v1311_v39  ;;  %vm590_vm3 = vweird.f32 %v1311_v39 }
  0xac   :  { %1108 = vrcp.f32 %v1311_v39  ;;  %vm605_vm1 = vweird.f32 %v1313_v40  ;;  %v609_v17 = vand.u32 2147483647, %v1313_v40  ;;  %v611_v23 = vand.u32 2147483648, %v1313_v40 }
  0xad   :  { %1110 = vrcp.f32 %v1313_v40  ;;  %v418_v42 = vpop.f32.mrf.mxu2  ;;  %v431_v43 = vpop.f32.mrf.mxu3  ;;  %v597_v29 = vor.u32 1.1754944e-38, %v596_v14  ;;  %vm1357_vm4 = vcmp.eq.f32.partialorder %v594_v13, 8.507059e+37 }
  0xae   :  { %v442_v44 = vpop.f32.mrf.mxu0  ;;  %vm610_vm8 = vcmp.eq.f32.partialorder %v609_v17, 8.507059e+37  ;;  %v612_v42 = vor.u32 1.1754944e-38, %v611_v23 }
  0xaf   :  { %v443_v47 = vadd.f32 %v442_v44, %v357_v41 }
  0xb0   :  { %v1105_v46 = vpop.eup %1104 }
  0xb1   :  { %v1107_v49 = vpop.eup %1106  ;;  %v1317_v50 = vadd.f32 1.0, %v1105_v46  ;;  %v1038_v54 = vmul.f32 -1.442695, %v443_v47 }
  0xb2   :  { %v455_v48 = vpop.f32.mrf.mxu1  ;;  %v1319_v51 = vpop.eup %1108  ;;  %v1321_v52 = vadd.f32 1.0, %v1107_v49 }
  0xb3   :  { %v1323_v53 = vpop.eup %1110  ;;  %1112 = vrcp.f32 %v1317_v50  ;;  %v456_v55 = vadd.f32 %v455_v48, %v358_v45  ;;  %v586_v60 = vmul.f32 %v1319_v51, %v1311_v39  ;;  %vm591_vm5 = vweird.f32 %v1319_v51 }
  0xb4   :  { %v601_v56 = vmul.f32 %v1323_v53, %v1313_v40  ;;  %1114 = vrcp.f32 %v1321_v52  ;;  %vm606_vm2 = vweird.f32 %v1323_v53  ;;  %v624_v34 = vand.u32 2147483647, %v1317_v50  ;;  %vm1387_vm10 = vmor %vm590_vm3, %vm591_vm5 }
  0xb5   :  { %v468_v61 = vpop.f32.mrf.mxu2  ;;  %v481_v63 = vpop.f32.mrf.mxu3  ;;  %1116 = vpow2.f32 %v1038_v54  ;;  %v1039_v0 = vmul.f32 -1.442695, %v456_v55  ;;  %v587_v7 = vsub.f32 1.0, %v586_v60  ;;  %vm1366_vm6 = vmor %vm605_vm1, %vm606_vm2  ;;  %v626_v35 = vand.u32 2147483648, %v1317_v50 }
  0xb6   :  { %v602_v62 = vsub.f32 1.0, %v601_v56  ;;  %v444_v1 = vpop.f32.mrf.mxu0  ;;  %v469_v3 = vadd.f32 %v468_v61, %v359_v58  ;;  %v482_v4 = vadd.f32 %v481_v63, %v360_v59  ;;  %vm620_vm9 = vweird.f32 %v1317_v50 }
  0xb7   :  { %1118 = vpow2.f32 %v1039_v0  ;;  %v588_v20 = vmul.f32 %v1319_v51, %v587_v7  ;;  %v641_v46 = vand.u32 2147483648, %v1321_v52  ;;  %vm635_vm11 = vweird.f32 %v1321_v52 }
  0xb8   :  { %v603_v8 = vmul.f32 %v1323_v53, %v602_v62  ;;  %v1040_v10 = vmul.f32 -1.442695, %v469_v3  ;;  %v1041_v15 = vmul.f32 -1.442695, %v482_v4  ;;  %v639_v49 = vand.u32 2147483647, %v1321_v52 }
  0xb9   :  { %v1333_v6 = vpop.eup %1112  ;;  %v589_v38 = vadd.f32 %v1319_v51, %v588_v20  ;;  %vm1397_vm12 = vcmp.eq.f32.partialorder %v624_v34, 8.507059e+37  ;;  %v627_v58 = vor.u32 1.1754944e-38, %v626_v35  ;;  %v1410_v1 = vor.u32 1.1754944e-38, %v641_v46 }
  0xba   :  { %v457_v5 = vpop.f32.mrf.mxu1  ;;  %v616_v9 = vmul.f32 %v1333_v6, %v1317_v50  ;;  %v1339_v12 = vpop.eup %1114  ;;  %1120 = vpow2.f32 %v1040_v10  ;;  %v604_v21 = vadd.f32 %v1323_v53, %v603_v8  ;;  %vm621_vm13 = vweird.f32 %v1333_v6 }
  0xbb   :  { %v1117_v19 = vpop.eup %1116  ;;  %1122 = vpow2.f32 %v1041_v15  ;;  %v631_v25 = vmul.f32 %v1339_v12, %v1321_v52  ;;  %v593_v60 = vsel %vm1387_vm10, %v1319_v51, %v589_v38  ;;  %vm636_vm14 = vweird.f32 %v1339_v12  ;;  %vm1425_vm15 = vmor %vm620_vm9, %vm621_vm13 }
  0xbc   :  { %v617_v24 = vsub.f32 1.0, %v616_v9  ;;  %v1353_v26 = vadd.f32 1.0, %v1117_v19  ;;  %v608_v40 = vsel %vm1366_vm6, %v1323_v53, %v604_v21  ;;  %v598_v9 = vsel %vm1357_vm4, %v597_v29, %v593_v60  ;;  %vm1459_vm3 = vmor %vm635_vm11, %vm636_vm14 }
  0xbd   :  { %v470_v22 = vpop.f32.mrf.mxu2  ;;  %v483_v27 = vpop.f32.mrf.mxu3  ;;  %v632_v44 = vsub.f32 1.0, %v631_v25  ;;  %v613_v55 = vsel %vm610_vm8, %v612_v42, %v608_v40  ;;  %vm1432_vm1 = vcmp.eq.f32.partialorder %v639_v49, 8.507059e+37  ;;  %vm789_vm6 = vcmask 1042434  }
  0xbe   :  { %v1119_v28 = vpop.eup %1118  ;;  %v494_v30 = vpop.f32.mrf.mxu0  ;;  %1124 = vrcp.f32 %v1353_v26  ;;  %v618_v43 = vmul.f32 %v1333_v6, %v617_v24  ;;  %v777_v7 = vrot.slane %v613_v55, 7  ;;  %v656_v51 = vand.u32 2147483648, %v1353_v26 }
  0xbf   :  { %v1373_v36 = vadd.f32 1.0, %v1119_v28  ;;  %v495_v37 = vadd.f32 %v494_v30, %v361_v11  ;;  %v633_v63 = vmul.f32 %v1339_v12, %v632_v44  ;;  %vm650_vm0 = vweird.f32 %v1353_v26 }
  0xc0   :  { %v1121_v41 = vpop.eup %1120  ;;  %v619_v62 = vadd.f32 %v1333_v6, %v618_v43  ;;  %v654_v14 = vand.u32 2147483647, %v1353_v26  ;;  %v1447_v22 = vsel %vm787_vm7, %v598_v9, %v777_v7  ;;  %v1451_v24 = vor.u32 1.1754944e-38, %v656_v51 }
  0xc1   :  { %v1123_v45 = vpop.eup %1122  ;;  %1126 = vrcp.f32 %v1373_v36  ;;  %v1393_v53 = vadd.f32 1.0, %v1121_v41  ;;  %v1042_v59 = vmul.f32 -1.442695, %v495_v37  ;;  %v634_v15 = vadd.f32 %v1339_v12, %v633_v63 }
  0xc2   :  { %v507_v57 = vpop.f32.mrf.mxu1  ;;  %v1395_v54 = vadd.f32 1.0, %v1123_v45  ;;  %v671_v50 = vand.u32 2147483648, %v1373_v36  ;;  %v623_v19 = vsel %vm1425_vm15, %v1333_v6, %v619_v62  ;;  %vm665_vm2 = vweird.f32 %v1373_v36 }
  0xc3   :  { %v508_v47 = vadd.f32 %v507_v57, %v362_v16  ;;  %1128 = vrcp.f32 %v1393_v53  ;;  %v669_v27 = vand.u32 2147483647, %v1373_v36  ;;  %v1468_v30 = vsel %vm1397_vm12, %v627_v58, %v623_v19 }
  0xc4   :  { %v1404_v61 = vpop.eup %1124  ;;  %1130 = vrcp.f32 %v1395_v54  ;;  %v672_v52 = vor.u32 1.1754944e-38, %v671_v50  ;;  %v638_v35 = vsel %vm1459_vm3, %v1339_v12, %v634_v15  ;;  %vm1477_vm5 = vcmp.eq.f32.partialorder %v654_v14, 8.507059e+37 }
  0xc5   :  { %v520_v39 = vpop.f32.mrf.mxu2  ;;  %v533_v0 = vpop.f32.mrf.mxu3  ;;  %v646_v3 = vmul.f32 %v1404_v61, %v1353_v26  ;;  %v1043_v4 = vmul.f32 -1.442695, %v508_v47  ;;  %1132 = vpow2.f32 %v1042_v59  ;;  %vm651_vm4 = vweird.f32 %v1404_v61 }
  0xc6   :  { %v496_v5 = vpop.f32.mrf.mxu0  ;;  %v521_v20 = vadd.f32 %v520_v39, %v363_v18  ;;  %v534_v21 = vadd.f32 %v533_v0, %v364_v31  ;;  %vm1483_vm8 = vcmp.eq.f32.partialorder %v669_v27, 8.507059e+37  ;;  %v684_v42 = vand.u32 2147483647, %v1393_v53  ;;  %vm1503_vm11 = vmor %vm650_vm0, %vm651_vm4 }
  0xc7   :  { %v1419_v10 = vpop.eup %1126  ;;  %v647_v13 = vsub.f32 1.0, %v646_v3  ;;  %1134 = vpow2.f32 %v1043_v4  ;;  %v686_v12 = vand.u32 2147483648, %v1393_v53  ;;  %v699_v59 = vand.u32 2147483647, %v1395_v54 }
  0xc8   :  { %v661_v17 = vmul.f32 %v1419_v10, %v1373_v36  ;;  %v1044_v28 = vmul.f32 -1.442695, %v521_v20  ;;  %v1045_v33 = vmul.f32 -1.442695, %v534_v21  ;;  %vm666_vm9 = vweird.f32 %v1419_v10 }
  0xc9   :  { %v1449_v23 = vpop.eup %1128  ;;  %v648_v2 = vmul.f32 %v1404_v61, %v647_v13  ;;  %v643_v39 = vsel %vm1432_vm1, %v1410_v1, %v638_v35  ;;  %vm1515_vm12 = vmor %vm665_vm2, %vm666_vm9  ;;  %vm680_vm13 = vweird.f32 %v1393_v53  ;;  %v701_v26 = vand.u32 2147483648, %v1395_v54 }
  0xca   :  { %v509_v8 = vpop.f32.mrf.mxu1  ;;  %v662_v25 = vsub.f32 1.0, %v661_v17  ;;  %v676_v18 = vmul.f32 %v1449_v23, %v1393_v53  ;;  %v1470_v31 = vpop.eup %1130  ;;  %1136 = vpow2.f32 %v1044_v28  ;;  %vm681_vm10 = vweird.f32 %v1449_v23 }
  0xcb   :  { %v1133_v57 = vpop.eup %1132  ;;  %v691_v40 = vmul.f32 %v1470_v31, %v1395_v54  ;;  %1138 = vpow2.f32 %v1045_v33  ;;  %v649_v45 = vadd.f32 %v1404_v61, %v648_v2  ;;  %vm696_vm14 = vweird.f32 %v1470_v31  ;;  %vm1523_vm15 = vmor %vm680_vm13, %vm681_vm10 }
  0xcc   :  { %v663_v32 = vmul.f32 %v1419_v10, %v662_v25  ;;  %v677_v38 = vsub.f32 1.0, %v676_v18  ;;  %v1489_v43 = vadd.f32 1.0, %v1133_v57  ;;  %vm695_vm0 = vweird.f32 %v1395_v54 }
  0xcd   :  { %v522_v29 = vpop.f32.mrf.mxu2  ;;  %v535_v34 = vpop.f32.mrf.mxu3  ;;  %v692_v47 = vsub.f32 1.0, %v691_v40  ;;  %v653_v36 = vsel %vm1503_vm11, %v1404_v61, %v649_v45  ;;  %v778_v53 = vrot.slane %v1468_v30, 6  ;;  %v779_v7 = vrot.slane %v643_v39, 5  ;;  %vm1543_vm3 = vmor %vm695_vm0, %vm696_vm14 }
  0xce   :  { %v1135_v44 = vpop.eup %1134  ;;  %v678_v46 = vmul.f32 %v1449_v23, %v677_v38  ;;  %v664_v48 = vadd.f32 %v1419_v10, %v663_v32  ;;  %1140 = vrcp.f32 %v1489_v43  ;;  %vm791_vm1 = vcmask 1041408  }
  0xcf   :  { %v1497_v49 = vadd.f32 1.0, %v1135_v44  ;;  %v693_v58 = vmul.f32 %v1470_v31, %v692_v47  ;;  %vm685_vm2 = vcmp.eq.f32.partialorder %v684_v42, 8.507059e+37  ;;  %v687_v54 = vor.u32 1.1754944e-38, %v686_v12 }
  0xd0   :  { %v679_v56 = vadd.f32 %v1449_v23, %v678_v46  ;;  %v1137_v62 = vpop.eup %1136  ;;  %v668_v4 = vsel %vm1515_vm12, %v1419_v10, %v664_v48  ;;  %vm1547_vm4 = vcmp.eq.f32.partialorder %v699_v59, 8.507059e+37  ;;  %v702_v10 = vor.u32 1.1754944e-38, %v701_v26 }
  0xd1   :  { %1142 = vrcp.f32 %v1497_v49  ;;  %v694_v0 = vadd.f32 %v1470_v31, %v693_v58  ;;  %v1139_v1 = vpop.eup %1138  ;;  %v1533_v3 = vadd.f32 1.0, %v1137_v62  ;;  %v658_v11 = vsel %vm1477_vm5, %v1451_v24, %v653_v36 }
  0xd2   :  { %v683_v5 = vsel %vm1523_vm15, %v1449_v23, %v679_v56  ;;  %v1551_v8 = vadd.f32 1.0, %v1139_v1  ;;  %v673_v15 = vsel %vm1483_vm8, %v672_v52, %v668_v4  ;;  %v731_v50 = vand.u32 2147483648, %v1497_v49 }
  0xd3   :  { %1144 = vrcp.f32 %v1533_v3  ;;  %v698_v13 = vsel %vm1543_vm3, %v1470_v31, %v694_v0  ;;  %v688_v16 = vsel %vm685_vm2, %v687_v54, %v683_v5  ;;  %v790_v19 = vsel %vm789_vm6, %v778_v53, %v779_v7 }
  0xd4   :  { %v1553_v9 = vpop.eup %1140  ;;  %1146 = vrcp.f32 %v1551_v8  ;;  %vm793_vm9 = vcmask 1044484   ;;  %vm795_vm5 = vcmask 1046534   ;;  %vm710_vm10 = vweird.f32 %v1489_v43 }
  0xd5   :  { %v706_v14 = vmul.f32 %v1553_v9, %v1489_v43  ;;  %v716_v20 = vand.u32 2147483648, %v1489_v43  ;;  %v703_v23 = vsel %vm1547_vm4, %v702_v10, %v698_v13  ;;  %v780_v25 = vrot.slane %v658_v11, 4 }
  0xd6   :  { %v781_v27 = vrot.slane %v673_v15, 3  ;;  %v782_v6 = vrot.slane %v688_v16, 2  ;;  %vm725_vm8 = vweird.f32 %v1497_v49  ;;  %v729_v18 = vand.u32 2147483647, %v1497_v49 }
  0xd7   :  { %v1143_v17 = vpop.eup %1142  ;;  %v707_v24 = vsub.f32 1.0, %v706_v14  ;;  %v783_v28 = vrot.slane %v703_v23, 1  ;;  %v732_v30 = vor.u32 1.1754944e-38, %v731_v50  ;;  %v744_v31 = vand.u32 2147483647, %v1533_v3 }
  0xd8   :  { %v721_v21 = vmul.f32 %v1143_v17, %v1497_v49  ;;  %v746_v32 = vand.u32 2147483648, %v1533_v3  ;;  %vm797_vm11 = vcmask 1045508   ;;  %vm726_vm12 = vweird.f32 %v1143_v17 }
  0xd9   :  { %v1145_v29 = vpop.eup %1144  ;;  %vm799_vm13 = vcmask 1043456   ;;  %v708_v35 = vmul.f32 %v1553_v9, %v707_v24  ;;  %v794_v37 = vsel %vm793_vm9, %v780_v25, %v781_v27  ;;  %v796_v38 = vsel %vm795_vm5, %v782_v6, %v783_v28  ;;  %vm1588_vm15 = vmor %vm725_vm8, %vm726_vm12 }
  0xda   :  { %v722_v2 = vsub.f32 1.0, %v721_v21  ;;  %v1147_v52 = vpop.eup %1146  ;;  %v736_v34 = vmul.f32 %v1145_v29, %v1533_v3  ;;  %v792_v42 = vsel %vm791_vm1, %v1447_v22, %v790_v19  ;;  %v798_v12 = vsel %vm797_vm11, %v794_v37, %v796_v38 }
  0xdb   :  { %v751_v57 = vmul.f32 %v1147_v52, %v1551_v8  ;;  %vm711_vm14 = vweird.f32 %v1553_v9  ;;  %v759_v46 = vand.u32 2147483647, %v1551_v8  ;;  %v800_v47 = vsel %vm799_vm13, %v792_v42, %v798_v12 }
  0xdc   :  { %v723_v33 = vmul.f32 %v1143_v17, %v722_v2  ;;  %v737_v41 = vsub.f32 1.0, %v736_v34  ;;  %vm741_vm0 = vweird.f32 %v1145_v29  ;;  %v761_v55 = vand.u32 2147483648, %v1551_v8  ;;  %806 = vst [vmem:[#allocation8] sm:$0xff] %v800_v47  ;;  %vm1599_vm4 = vmor %vm710_vm10, %vm711_vm14 }
  0xdd   :  { %v752_v45 = vsub.f32 1.0, %v751_v57  ;;  %vm730_vm2 = vcmp.eq.f32.partialorder %v729_v18, 8.507059e+37  ;;  %vm756_vm3 = vweird.f32 %v1147_v52  ;;  %v709_v49 = vadd.f32 %v1553_v9, %v708_v35 }
  0xde   :  { %v724_v40 = vadd.f32 %v1143_v17, %v723_v33  ;;  %v738_v48 = vmul.f32 %v1145_v29, %v737_v41  ;;  %vm740_vm9 = vweird.f32 %v1533_v3  ;;  %v714_v39 = vand.u32 2147483647, %v1489_v43 }
  0xdf   :  { %v753_v56 = vmul.f32 %v1147_v52, %v752_v45  ;;  %vm742_vm5 = vmor %vm740_vm9, %vm741_vm0  ;;  %vm745_vm8 = vcmp.eq.f32.partialorder %v744_v31, 8.507059e+37  ;;  %v747_v26 = vor.u32 1.1754944e-38, %v746_v32  ;;  %vm755_vm11 = vweird.f32 %v1551_v8 }
  0xe0   :  { %v728_v22 = vsel %vm1588_vm15, %v1143_v17, %v724_v40  ;;  %v739_v59 = vadd.f32 %v1145_v29, %v738_v48  ;;  %vm757_vm12 = vmor %vm755_vm11, %vm756_vm3  ;;  %vm760_vm13 = vcmp.eq.f32.partialorder %v759_v46, 8.507059e+37  ;;  %v762_v63 = vor.u32 1.1754944e-38, %v761_v55 }
  0xe1   :  { %v733_v60 = vsel %vm730_vm2, %v732_v30, %v728_v22  ;;  %v754_v62 = vadd.f32 %v1147_v52, %v753_v56  ;;  %v807_v36 = vlaneseq  ;;  %v713_v53 = vsel %vm1599_vm4, %v1553_v9, %v709_v49 }
  0xe2   :  { %v743_v0 = vsel %vm742_vm5, %v1145_v29, %v739_v59  ;;  %v784_v4 = vrot.slane %v733_v60, 7  ;;  %v717_v43 = vor.u32 1.1754944e-38, %v716_v20  ;;  %vm715_vm10 = vcmp.eq.f32.partialorder %v714_v39, 8.507059e+37 }
  0xe3   :  { %v748_v1 = vsel %vm745_vm8, %v747_v26, %v743_v0  ;;  %v758_v3 = vsel %vm757_vm12, %v1147_v52, %v754_v62  ;;  %vm809_vm14 = vcmp.lt.s32.totalorder %v807_v36, 512 }
  0xe4   :  { %v763_v5 = vsel %vm760_vm13, %v762_v63, %v758_v3  ;;  %v785_v7 = vrot.slane %v748_v1, 6  ;;  %v718_v61 = vsel %vm715_vm10, %v717_v43, %v713_v53 }
  0xe5   :  { %v786_v54 = vrot.slane %v763_v5, 5  ;;  %v801_v51 = vsel %vm787_vm7, %v718_v61, %v784_v4 }
  0xe7   :  { %v802_v8 = vsel %vm789_vm6, %v785_v7, %v786_v54 }
  0xe8   :  { %v803_v9 = vsel %vm791_vm1, %v801_v51, %v802_v8 }
  0xe9   :  { %811 = vst.msk [vmem:[#allocation8 + $0x8] sm:$0xf] %vm809_vm14, %v803_v9 }
  0xea   :  { %822 = dma.vmem_to_hbm [thread:$0]  %s818_s2, 192, %s820_s30, [#allocation4]  }
  0xeb   :  { %1248 = dma.done.wait [#allocation4], 192  }
  0xec   :  { %1249 = vsyncadd [#allocation4], 4294967104 }
  0xed   :  { %827 = vsyncpa [#allocation3], 1 }
  0xee   :  { %828 = vsyncpa [#allocation6], 1 }
  0xef   :  { %829 = vsyncpa [#allocation4], 1 }

</bundles_post_ra>
